<compile_context>
chip_gen: v5e
topology: v5e:2x2
jax: 0.10.0
libtpu: 0.0.40
codegen_flags: <defaults>
</compile_context>

<pallas_src>
import math

import jax
import jax.numpy as jnp
from jax.experimental import pallas as pl
from jax.experimental.pallas import tpu as pltpu

HIDDEN = 1024


def _softplus(x):
    # numerically stable softplus
    return jnp.maximum(x, 0.0) + jnp.log1p(jnp.exp(-jnp.abs(x)))


def gamma_kernel(scalars_ref, w2_ref, b2_ref, w3_ref, t_ref, out_ref):
    # scalars_ref (SMEM, shape (5,)): [w1, b1, b3, gamma_0, gamma_1]
    w1 = scalars_ref[0]
    b1 = scalars_ref[1]
    b3 = scalars_ref[2]
    g0 = scalars_ref[3]
    g1 = scalars_ref[4]

    w1p = _softplus(w1)            # scalar, positive weight of l1
    w2p = _softplus(w2_ref[...])   # (1, HIDDEN) positive weights of l2
    w3p = _softplus(w3_ref[...])   # (1, HIDDEN) positive weights of l3
    b2 = b2_ref[...]               # (1, HIDDEN)

    def l3(h):
        # h: (M, HIDDEN) -> (M, 1).  Kernel is EUP-bound (sigmoids), so the
        # VPU multiply + XLU lane reduce are hidden under the EUP slot.
        return jnp.sum(h * w3p, axis=-1, keepdims=True) + b3

    # --- t-independent endpoints: one (1, HIDDEN) row each ---------------
    l1_0 = b1                      # scalar, l1(0)
    l1_1 = w1p + b1                # scalar, l1(1)
    gt_0 = l1_0 + l3(jax.nn.sigmoid(l1_0 * w2p + b2))     # (1, 1)
    gt_1 = l1_1 + l3(jax.nn.sigmoid(l1_1 * w2p + b2))     # (1, 1)

    # --- batch tile: the only (TILE_N, HIDDEN) pass -----------------------
    t = t_ref[...]                                         # (TILE_N, 1)
    l1_t = t * w1p + b1                                    # (TILE_N, 1)
    h = jax.nn.sigmoid(l1_t * w2p + b2)                    # (TILE_N, HIDDEN)
    gt_t = l1_t + l3(h)                                    # (TILE_N, 1)

    # single (1,1) scale instead of a per-row divide
    scale = (g1 - g0) / (gt_1 - gt_0)                      # (1, 1)
    out_ref[...] = g0 + (gt_t - gt_0) * scale


def gamma_network_forward(t, params, *, tile_n=512):
    """t: (N, 1) float32.  Returns gamma(t): (N, 1) float32."""
    t = jnp.asarray(t, jnp.float32)
    if t.ndim == 1:
        t = t[:, None]
    N = t.shape[0]

    scalars = jnp.stack(
        [params["w1"], params["b1"], params["b3"],
         params["gamma_0"], params["gamma_1"]]
    ).astype(jnp.float32)                                   # (5,)
    w2 = params["w2"].reshape(1, HIDDEN).astype(jnp.float32)
    b2 = params["b2"].reshape(1, HIDDEN).astype(jnp.float32)
    w3 = params["w3"].reshape(1, HIDDEN).astype(jnp.float32)

    # Batch tile: multiple of 8 (sublane), capped so the (tile, HIDDEN)
    # hidden activation stays ~2 MiB (fits v7x's smaller VMEM comfortably).
    tile = min(tile_n, ((N + 7) // 8) * 8)
    n_pad = ((N + tile - 1) // tile) * tile
    t_p = t if n_pad == N else jnp.pad(t, ((0, n_pad - N), (0, 0)))

    out = pl.pallas_call(
        gamma_kernel,
        out_shape=jax.ShapeDtypeStruct((n_pad, 1), jnp.float32),
        grid_spec=pltpu.PrefetchScalarGridSpec(
            num_scalar_prefetch=0,
            grid=(n_pad // tile,),
            in_specs=[
                pl.BlockSpec(memory_space=pltpu.MemorySpace.SMEM),  # scalars
                pl.BlockSpec((1, HIDDEN), lambda i: (0, 0)),        # w2 (resident)
                pl.BlockSpec((1, HIDDEN), lambda i: (0, 0)),        # b2 (resident)
                pl.BlockSpec((1, HIDDEN), lambda i: (0, 0)),        # w3 (resident)
                pl.BlockSpec((tile, 1), lambda i: (i, 0)),          # t  (blocked)
            ],
            out_specs=pl.BlockSpec((tile, 1), lambda i: (i, 0)),
        ),
        compiler_params=pltpu.CompilerParams(
            dimension_semantics=("parallel",)),
    )(scalars, w2, b2, w3, t_p)
    return out[:N]


def init_params(key):
    """Deterministic init mirroring PositiveLinear.reset_parameters
    (kaiming_uniform(a=sqrt(5)) == U(-1/sqrt(fan_in), 1/sqrt(fan_in)),
     then weight += -2; bias ~ U(-1/sqrt(fan_in), 1/sqrt(fan_in)))."""
    k = jax.random.split(key, 6)
    offset = -2.0
    # l1: in=1, out=1
    bound1 = 1.0 / math.sqrt(1)
    w1 = jax.random.uniform(k[0], (), minval=-bound1, maxval=bound1) + offset
    b1 = jax.random.uniform(k[1], (), minval=-bound1, maxval=bound1)
    # l2: in=1, out=HIDDEN
    w2 = jax.random.uniform(k[2], (HIDDEN,), minval=-bound1, maxval=bound1) + offset
    b2 = jax.random.uniform(k[3], (HIDDEN,), minval=-bound1, maxval=bound1)
    # l3: in=HIDDEN, out=1
    bound3 = 1.0 / math.sqrt(HIDDEN)
    w3 = jax.random.uniform(k[4], (HIDDEN,), minval=-bound3, maxval=bound3) + offset
    b3 = jax.random.uniform(k[5], (), minval=-bound3, maxval=bound3)
    return {
        "w1": w1, "b1": b1,
        "w2": w2, "b2": b2,
        "w3": w3, "b3": b3,
        "gamma_0": jnp.float32(-5.0),
        "gamma_1": jnp.float32(10.0),
    }


def gamma_network_ref(t, p):
    """Pure-JAX reference (mirrors the PyTorch forward)."""
    def sp(x):
        return jnp.maximum(x, 0.0) + jnp.log1p(jnp.exp(-jnp.abs(x)))

    def gamma_tilde(x):
        l1_t = x * sp(p["w1"]) + p["b1"]                               # (N,1)
        h = jax.nn.sigmoid(l1_t @ sp(p["w2"]).reshape(1, HIDDEN) + p["b2"])
        l3_out = h @ sp(p["w3"]).reshape(HIDDEN, 1) + p["b3"]
        return l1_t + l3_out

    gt_t = gamma_tilde(t)
    gt_0 = gamma_tilde(jnp.zeros_like(t))
    gt_1 = gamma_tilde(jnp.ones_like(t))
    norm = (gt_t - gt_0) / (gt_1 - gt_0)
    return p["gamma_0"] + (p["gamma_1"] - p["gamma_0"]) * norm


if __name__ == "__main__":
    key = jax.random.PRNGKey(0)
    params = init_params(key)

    # small example: seq=8 time points in [0, 1], shape (N, 1) like the module's t
    N = 8
    t = jnp.linspace(0.0, 1.0, N, dtype=jnp.float32).reshape(N, 1)

    gamma = gamma_network_forward(t, params)
    gamma = jax.block_until_ready(gamma)
    ref = gamma_network_ref(t, params)
    assert gamma.shape == (N, 1)
    assert jnp.allclose(gamma, ref, atol=1e-4, rtol=1e-4), (gamma, ref)

    # second small case exercising the grid + padding path (tile_n=16 -> 4 tiles)
    N2 = 50
    t2 = jnp.linspace(0.0, 1.0, N2, dtype=jnp.float32).reshape(N2, 1)
    gamma2 = jax.block_until_ready(gamma_network_forward(t2, params, tile_n=16))
    ref2 = gamma_network_ref(t2, params)
    assert gamma2.shape == (N2, 1)
    assert jnp.allclose(gamma2, ref2, atol=1e-4, rtol=1e-4), (gamma2, ref2)

    print("KERNEL_OK")
</pallas_src>

<mosaic_0001>
module attributes {stable_mosaic.version = 11 : i64} {
  func.func @gamma_kernel(%arg0: i32, %arg1: memref<5xf32, #tpu.memory_space<smem>>, %arg2: memref<1x1024xf32, #tpu.memory_space<vmem>>, %arg3: memref<1x1024xf32, #tpu.memory_space<vmem>>, %arg4: memref<1x1024xf32, #tpu.memory_space<vmem>>, %arg5: memref<8x1xf32, #tpu.memory_space<vmem>>, %arg6: memref<8x1xf32, #tpu.memory_space<vmem>>) attributes {dimension_semantics = [#tpu.dimension_semantics<parallel>], iteration_bounds = array<i64: 1>, scalar_prefetch = 0 : i64, scratch_operands = 0 : i64, tpu.core_type = #tpu.core_type<tc>, window_params = [{transform_indices = @transform_0, window_bounds = array<i64: 5>}, {pipeline_mode = #tpu.pipeline_mode<synchronous>, transform_indices = @transform_1, window_bounds = array<i64: 1, 1024>}, {pipeline_mode = #tpu.pipeline_mode<synchronous>, transform_indices = @transform_2, window_bounds = array<i64: 1, 1024>}, {pipeline_mode = #tpu.pipeline_mode<synchronous>, transform_indices = @transform_3, window_bounds = array<i64: 1, 1024>}, {transform_indices = @transform_4, window_bounds = array<i64: 8, 1>}, {transform_indices = @transform_5, window_bounds = array<i64: 8, 1>}]} {
    %c0 = arith.constant 0 : index
    %0 = memref.load %arg1[%c0] : memref<5xf32, #tpu.memory_space<smem>>
    %c1 = arith.constant 1 : index
    %1 = memref.load %arg1[%c1] : memref<5xf32, #tpu.memory_space<smem>>
    %c2 = arith.constant 2 : index
    %2 = memref.load %arg1[%c2] : memref<5xf32, #tpu.memory_space<smem>>
    %c3 = arith.constant 3 : index
    %3 = memref.load %arg1[%c3] : memref<5xf32, #tpu.memory_space<smem>>
    %c4 = arith.constant 4 : index
    %4 = memref.load %arg1[%c4] : memref<5xf32, #tpu.memory_space<smem>>
    %cst = arith.constant 0.000000e+00 : f32
    %5 = arith.maximumf %0, %cst : f32
    %6 = math.absf %0 : f32
    %cst_0 = arith.constant 0.000000e+00 : f32
    %7 = arith.subf %cst_0, %6 : f32
    %8 = math.exp %7 : f32
    %9 = math.log1p %8 : f32
    %10 = arith.addf %5, %9 : f32
    %c0_1 = arith.constant 0 : index
    %c0_2 = arith.constant 0 : index
    %11 = vector.load %arg2[%c0_1, %c0_2] : memref<1x1024xf32, #tpu.memory_space<vmem>>, vector<1x1024xf32>
    %cst_3 = arith.constant 0.000000e+00 : f32
    %12 = vector.broadcast %cst_3 : f32 to vector<1x1024xf32>
    %13 = arith.maximumf %11, %12 : vector<1x1024xf32>
    %14 = math.absf %11 : vector<1x1024xf32>
    %cst_4 = arith.constant 0.000000e+00 : f32
    %15 = vector.broadcast %cst_4 : f32 to vector<1x1024xf32>
    %16 = arith.subf %15, %14 : vector<1x1024xf32>
    %17 = math.exp %16 : vector<1x1024xf32>
    %18 = math.log1p %17 : vector<1x1024xf32>
    %19 = arith.addf %13, %18 : vector<1x1024xf32>
    %c0_5 = arith.constant 0 : index
    %c0_6 = arith.constant 0 : index
    %20 = vector.load %arg4[%c0_5, %c0_6] : memref<1x1024xf32, #tpu.memory_space<vmem>>, vector<1x1024xf32>
    %cst_7 = arith.constant 0.000000e+00 : f32
    %21 = vector.broadcast %cst_7 : f32 to vector<1x1024xf32>
    %22 = arith.maximumf %20, %21 : vector<1x1024xf32>
    %23 = math.absf %20 : vector<1x1024xf32>
    %cst_8 = arith.constant 0.000000e+00 : f32
    %24 = vector.broadcast %cst_8 : f32 to vector<1x1024xf32>
    %25 = arith.subf %24, %23 : vector<1x1024xf32>
    %26 = math.exp %25 : vector<1x1024xf32>
    %27 = math.log1p %26 : vector<1x1024xf32>
    %28 = arith.addf %22, %27 : vector<1x1024xf32>
    %c0_9 = arith.constant 0 : index
    %c0_10 = arith.constant 0 : index
    %29 = vector.load %arg3[%c0_9, %c0_10] : memref<1x1024xf32, #tpu.memory_space<vmem>>, vector<1x1024xf32>
    %30 = arith.addf %10, %1 : f32
    %31 = vector.broadcast %1 : f32 to vector<1x1024xf32>
    %32 = arith.mulf %31, %19 : vector<1x1024xf32>
    %33 = arith.addf %32, %29 : vector<1x1024xf32>
    %34 = arith.negf %33 : vector<1x1024xf32>
    %35 = math.exp %34 : vector<1x1024xf32>
    %cst_11 = arith.constant 1.000000e+00 : f32
    %36 = vector.broadcast %cst_11 : f32 to vector<1x1024xf32>
    %37 = arith.addf %36, %35 : vector<1x1024xf32>
    %38 = arith.divf %36, %37 : vector<1x1024xf32>
    %39 = arith.mulf %38, %28 : vector<1x1024xf32>
    %cst_12 = arith.constant dense<0.000000e+00> : vector<1xf32>
    %40 = vector.multi_reduction <add>, %39, %cst_12 [1] : vector<1x1024xf32> to vector<1xf32>
    %41 = vector.shape_cast %40 : vector<1xf32> to vector<1x1xf32>
    %42 = vector.broadcast %2 : f32 to vector<1x1xf32>
    %43 = arith.addf %41, %42 : vector<1x1xf32>
    %44 = vector.broadcast %1 : f32 to vector<1x1xf32>
    %45 = arith.addf %44, %43 : vector<1x1xf32>
    %46 = vector.broadcast %30 : f32 to vector<1x1024xf32>
    %47 = arith.mulf %46, %19 : vector<1x1024xf32>
    %48 = arith.addf %47, %29 : vector<1x1024xf32>
    %49 = arith.negf %48 : vector<1x1024xf32>
    %50 = math.exp %49 : vector<1x1024xf32>
    %cst_13 = arith.constant 1.000000e+00 : f32
    %51 = vector.broadcast %cst_13 : f32 to vector<1x1024xf32>
    %52 = arith.addf %51, %50 : vector<1x1024xf32>
    %53 = arith.divf %51, %52 : vector<1x1024xf32>
    %54 = arith.mulf %53, %28 : vector<1x1024xf32>
    %cst_14 = arith.constant dense<0.000000e+00> : vector<1xf32>
    %55 = vector.multi_reduction <add>, %54, %cst_14 [1] : vector<1x1024xf32> to vector<1xf32>
    %56 = vector.shape_cast %55 : vector<1xf32> to vector<1x1xf32>
    %57 = vector.broadcast %2 : f32 to vector<1x1xf32>
    %58 = arith.addf %56, %57 : vector<1x1xf32>
    %59 = vector.broadcast %30 : f32 to vector<1x1xf32>
    %60 = arith.addf %59, %58 : vector<1x1xf32>
    %c0_15 = arith.constant 0 : index
    %c0_16 = arith.constant 0 : index
    %61 = vector.load %arg5[%c0_15, %c0_16] : memref<8x1xf32, #tpu.memory_space<vmem>>, vector<8x1xf32>
    %62 = vector.broadcast %10 : f32 to vector<8x1xf32>
    %63 = arith.mulf %61, %62 : vector<8x1xf32>
    %64 = vector.broadcast %1 : f32 to vector<8x1xf32>
    %65 = arith.addf %63, %64 : vector<8x1xf32>
    %66 = vector.broadcast %65 : vector<8x1xf32> to vector<8x1024xf32>
    %67 = vector.broadcast %19 : vector<1x1024xf32> to vector<8x1024xf32>
    %68 = arith.mulf %66, %67 : vector<8x1024xf32>
    %69 = vector.broadcast %29 : vector<1x1024xf32> to vector<8x1024xf32>
    %70 = arith.addf %68, %69 : vector<8x1024xf32>
    %71 = arith.negf %70 : vector<8x1024xf32>
    %72 = math.exp %71 : vector<8x1024xf32>
    %cst_17 = arith.constant 1.000000e+00 : f32
    %73 = vector.broadcast %cst_17 : f32 to vector<8x1024xf32>
    %74 = arith.addf %73, %72 : vector<8x1024xf32>
    %75 = arith.divf %73, %74 : vector<8x1024xf32>
    %76 = vector.broadcast %28 : vector<1x1024xf32> to vector<8x1024xf32>
    %77 = arith.mulf %75, %76 : vector<8x1024xf32>
    %cst_18 = arith.constant dense<0.000000e+00> : vector<8xf32>
    %78 = vector.multi_reduction <add>, %77, %cst_18 [1] : vector<8x1024xf32> to vector<8xf32>
    %79 = vector.shape_cast %78 : vector<8xf32> to vector<8x1xf32>
    %80 = vector.broadcast %2 : f32 to vector<8x1xf32>
    %81 = arith.addf %79, %80 : vector<8x1xf32>
    %82 = arith.addf %65, %81 : vector<8x1xf32>
    %83 = arith.subf %4, %3 : f32
    %84 = arith.subf %60, %45 : vector<1x1xf32>
    %85 = vector.broadcast %83 : f32 to vector<1x1xf32>
    %86 = arith.divf %85, %84 : vector<1x1xf32>
    %87 = vector.broadcast %45 : vector<1x1xf32> to vector<8x1xf32>
    %88 = arith.subf %82, %87 : vector<8x1xf32>
    %89 = vector.broadcast %86 : vector<1x1xf32> to vector<8x1xf32>
    %90 = arith.mulf %88, %89 : vector<8x1xf32>
    %91 = vector.broadcast %3 : f32 to vector<8x1xf32>
    %92 = arith.addf %91, %90 : vector<8x1xf32>
    %c0_19 = arith.constant 0 : index
    %c0_20 = arith.constant 0 : index
    %93 = vector.load %arg6[%c0_19, %c0_20] : memref<8x1xf32, #tpu.memory_space<vmem>>, vector<8x1xf32>
    tpu.vector_store %arg6[%c0_19, %c0_20], %92 {strides = array<i32>} : memref<8x1xf32, #tpu.memory_space<vmem>>, vector<8x1xf32>,
    return
  }
  func.func @transform_0(%arg0: i32) -> i32 {
    %c0_i32 = arith.constant 0 : i32
    %c0_i32_0 = arith.constant 0 : i32
    return %c0_i32 : i32
  }
  func.func @transform_1(%arg0: i32) -> (i32, i32) {
    %c0_i32 = arith.constant 0 : i32
    %c0_i32_0 = arith.constant 0 : i32
    %c0_i32_1 = arith.constant 0 : i32
    return %c0_i32, %c0_i32_0 : i32, i32
  }
  func.func @transform_2(%arg0: i32) -> (i32, i32) {
    %c0_i32 = arith.constant 0 : i32
    %c0_i32_0 = arith.constant 0 : i32
    %c0_i32_1 = arith.constant 0 : i32
    return %c0_i32, %c0_i32_0 : i32, i32
  }
  func.func @transform_3(%arg0: i32) -> (i32, i32) {
    %c0_i32 = arith.constant 0 : i32
    %c0_i32_0 = arith.constant 0 : i32
    %c0_i32_1 = arith.constant 0 : i32
    return %c0_i32, %c0_i32_0 : i32, i32
  }
  func.func @transform_4(%arg0: i32) -> (i32, i32) {
    %c0_i32 = arith.constant 0 : i32
    %c0_i32_0 = arith.constant 0 : i32
    return %arg0, %c0_i32 : i32, i32
  }
  func.func @transform_5(%arg0: i32) -> (i32, i32) {
    %c0_i32 = arith.constant 0 : i32
    %c0_i32_0 = arith.constant 0 : i32
    return %arg0, %c0_i32 : i32, i32
  }
}

</mosaic_0001>

<bundles_post_ra>
// kernel: tpu_custom_call.1
= control target key start
LH: loop header
LB: loop body
LE: loop exit
PB: predicated region body
PF: predicated region fallthrough
CT: control target
= control target key end

     0   :  { %10 = vsyncpa [#allocation4], 0  ;;  %s984_s0 = inlined_call_operand.vmem [shape: f32[5], index: 0, kind: input, shape index: {}]   ;;  %s985_s1 = inlined_call_operand.vmem [shape: f32[1,1024], index: 1, kind: input, shape index: {}]   ;;  %s986_s2 = inlined_call_operand.hbm [shape: f32[1,1024], index: 2, kind: input, shape index: {}]   ;;  %s987_s3 = inlined_call_operand.hbm [shape: f32[1,1024], index: 3, kind: input, shape index: {}]   ;;  %s988_s4 = inlined_call_operand.vmem [shape: f32[8,1], index: 4, kind: input, shape index: {}]   ;;  %s989_s5 = inlined_call_operand.vmem [shape: f32[8,1], index: 5, kind: output, shape index: {}]  }
   0x1   :  { %11 = vsyncpa [#allocation3], 0  ;;  %s18_s20 = sshll.u32 %s984_s0, 4  ;;  %s19_s20 = int_to_ptr.vmem [resolvable:$true] %s18_s20 }
   0x2   :  { %12 = vsyncpa [#allocation7], 0  ;;  %s29_s23 = sshll.u32 %s986_s2, 4  ;;  %s663_s24 = smov [#allocation2]   ;;  %s30_s23 = int_to_ptr.hbm [resolvable:$true] %s29_s23 }
   0x3   :  { %21 = dma.vmem_to_smem %s19_s20, 16, %s663_s24, [#allocation4]  }
   0x4   :  { %s664_s25 = smov [#allocation5]   ;;  %s40_s29 = sshll.u32 %s987_s3, 4  ;;  %s41_s29 = int_to_ptr.hbm [resolvable:$true] %s40_s29 }
   0x5   :  { %s31_s26 = sshll.u32 %s664_s25, 4  ;;  %s665_s30 = smov [#allocation6]   ;;  %s32_s26 = int_to_ptr.vmem [resolvable:$true] %s31_s26 }
   0x6   :  { %34 = dma.hbm_to_vmem [thread:$0]  %s30_s23, 128, %s32_s26, [#allocation3]  }
   0x7   :  { %s42_s0 = sshll.u32 %s665_s30, 4  ;;  %s43_s0 = int_to_ptr.vmem [resolvable:$true] %s42_s0 }
   0x8   :  { %45 = dma.hbm_to_vmem [thread:$0]  %s41_s29, 128, %s43_s0, [#allocation7]  }
   0x9   :  { %657 = dma.done.wait [#allocation4], 16  }
   0xa   :  { %658 = vsyncadd [#allocation4], 4294967280 }
   0xb   :  { %659 = dma.done.wait [#allocation3], 128  }
   0xc   :  { %660 = vsyncadd [#allocation3], 4294967168 }
   0xd   :  { %661 = dma.done.wait [#allocation7], 128  }
   0xe   :  { %662 = vsyncadd [#allocation7], 4294967168 }
   0xf   :  { %60 = sfence }
  0x10   :  { %s707_s2 = sld [smem:[#allocation2]]  ;;  %v85_v8 = vld [vmem:[%s985_s1] sm:$0xff]  ;;  %v101_v25 = vld [vmem:[#allocation6] sm:$0xff]  ;;  %v666_v34 = vmov 0   ;;  %s667_s1 = smov 0.0   ;;  %vm159_vm7 = vcmask 1040384  }
  0x11   :  { %v87_v10 = vand.u32 2147483647, %v85_v8  ;;  %s713_s10 = sld [smem:[#allocation2 + $0x1]]  ;;  %v86_v22 = vmax.f32 %v85_v8, 0.0  ;;  %v103_v26 = vand.u32 2147483647, %v101_v25  ;;  %542 = vset.pattern.permute.xlu0 %v666_v34 }
  0x12   :  { %v717_v30 = vld [vmem:[#allocation5] sm:$0xff]  ;;  %v102_v56 = vmax.f32 %v101_v25, 0.0  ;;  %s521_s17 = sld [smem:[#allocation2 + $0x3]] }
  0x13   :  { %v88_v13 = vsub.f32 0.0, %v87_v10  ;;  %v104_v29 = vsub.f32 0.0, %v103_v26  ;;  %v239_v53 = vld [vmem:[%s988_s4] sm:$0xff]  ;;  %s520_s4 = sld [smem:[#allocation2 + $0x2]] }
  0x14   :  { %s522_s18 = sld [smem:[#allocation2 + $0x4]] }
  0x15   :  { %v89_v15 = vmul.f32 1.442695, %v88_v13  ;;  %v105_v32 = vmul.f32 1.442695, %v104_v29 }
  0x16   :  { %s67_s6 = sand.u32 2147483647, %s707_s2  ;;  %s66_s11 = smax.f32 %s667_s1, %s707_s2 }
  0x17   :  { %s68_s7 = ssub.f32 0.0, %s67_s6  ;;  %v720_v31 = vstv %s713_s10 }
  0x19   :  { %v69_v0 = vstv %s68_s7 }
  0x1a   :  { %v70_v1 = vmul.f32 1.442695, %v69_v0  ;;  %s486_s19 = ssub.f32 %s522_s18, %s521_s17 }
  0x1c   :  { %543 = vpow2.f32 %v70_v1 }
  0x22   :  { %v544_v2 = vpop.eup %543 }
  0x23   :  { %533 = vpush %v544_v2 }
  0x54   :  { %s534_s3 = spop %533 }
  0x55   :  { %v73_v3 = vstv %s534_s3 }
  0x56   :  { %v74_v4 = vadd.f32 1.0, %v73_v3  ;;  %v77_v5 = vmul.f32 -0.5, %v73_v3  ;;  %v80_v7 = vand.u32 2147483647, %v73_v3 }
  0x58   :  { %545 = vlog2.f32 %v74_v4  ;;  %v78_v6 = vadd.f32 1.0, %v77_v5  ;;  %vm81_vm0 = vcmp.lt.f32.partialorder %v80_v7, 0.0004427343 }
  0x59   :  { %547 = vpow2.f32 %v89_v15 }
  0x5a   :  { %v79_v11 = vmul.f32 %v78_v6, %v73_v3 }
  0x5e   :  { %v546_v9 = vpop.eup %545 }
  0x5f   :  { %v76_v12 = vmul.f32 0.6931472, %v546_v9  ;;  %v548_v16 = vpop.eup %547 }
  0x60   :  { %v91_v17 = vadd.f32 1.0, %v548_v16  ;;  %v94_v18 = vmul.f32 -0.5, %v548_v16  ;;  %v97_v21 = vand.u32 2147483647, %v548_v16 }
  0x61   :  { %v82_v14 = vsel %vm81_vm0, %v79_v11, %v76_v12 }
  0x62   :  { %535 = vpush %v82_v14  ;;  %549 = vlog2.f32 %v91_v17  ;;  %v95_v19 = vadd.f32 1.0, %v94_v18  ;;  %vm98_vm1 = vcmp.lt.f32.partialorder %v97_v21, 0.0004427343 }
  0x63   :  { %551 = vpow2.f32 %v105_v32 }
  0x64   :  { %v96_v24 = vmul.f32 %v548_v16, %v95_v19 }
  0x68   :  { %v550_v20 = vpop.eup %549 }
  0x69   :  { %v93_v23 = vmul.f32 0.6931472, %v550_v20  ;;  %v552_v37 = vpop.eup %551 }
  0x6a   :  { %v107_v39 = vadd.f32 1.0, %v552_v37  ;;  %v110_v41 = vmul.f32 -0.5, %v552_v37  ;;  %v113_v46 = vand.u32 2147483647, %v552_v37 }
  0x6b   :  { %v99_v27 = vsel %vm98_vm1, %v96_v24, %v93_v23 }
  0x6c   :  { %v715_v28 = vadd.f32 %v99_v27, %v86_v22  ;;  %v111_v43 = vadd.f32 1.0, %v110_v41  ;;  %vm726_vm2 = vcmp.lt.f32.partialorder %v113_v46, 0.0004427343 }
  0x6e   :  { %v120_v33 = vmul.f32 %v720_v31, %v715_v28  ;;  %v112_v49 = vmul.f32 %v552_v37, %v111_v43 }
  0x70   :  { %v121_v35 = vadd.f32 %v120_v33, %v717_v30 }
  0x72   :  { %v523_v36 = vmul.f32 -1.442695, %v121_v35 }
  0x74   :  { %553 = vpow2.f32 %v523_v36 }
  0x7a   :  { %v554_v38 = vpop.eup %553 }
  0x7b   :  { %v125_v40 = vadd.f32 1.0, %v554_v38 }
  0x7d   :  { %555 = vrcp.f32 %v125_v40  ;;  %v137_v52 = vand.u32 2147483648, %v125_v40  ;;  %vm131_vm3 = vweird.f32 %v125_v40  ;;  %v135_v55 = vand.u32 2147483647, %v125_v40 }
  0x7e   :  { %557 = vlog2.f32 %v107_v39 }
  0x7f   :  { %v138_v59 = vor.u32 1.1754944e-38, %v137_v52  ;;  %vm136_vm6 = vcmp.eq.f32.partialorder %v135_v55, 8.507059e+37 }
  0x83   :  { %v556_v42 = vpop.eup %555 }
  0x84   :  { %v127_v44 = vmul.f32 %v556_v42, %v125_v40  ;;  %v558_v45 = vpop.eup %557  ;;  %vm132_vm4 = vweird.f32 %v556_v42 }
  0x85   :  { %v109_v48 = vmul.f32 0.6931472, %v558_v45  ;;  %vm133_vm5 = vmor %vm131_vm3, %vm132_vm4 }
  0x86   :  { %v128_v47 = vsub.f32 1.0, %v127_v44 }
  0x87   :  { %v115_v58 = vsel %vm726_vm2, %v112_v49, %v109_v48 }
  0x88   :  { %v129_v50 = vmul.f32 %v556_v42, %v128_v47  ;;  %v743_v1 = vadd.f32 %v115_v58, %v102_v56 }
  0x8a   :  { %v130_v54 = vadd.f32 %v556_v42, %v129_v50 }
  0x8c   :  { %v134_v62 = vsel %vm133_vm5, %v556_v42, %v130_v54 }
  0x8d   :  { %v139_v3 = vsel %vm136_vm6, %v138_v59, %v134_v62 }
  0x8e   :  { %v141_v5 = vmul.f32 %v139_v3, %v743_v1 }
  0x90   :  { %v143_v6 = vperm.slane %v141_v5, 0  ;;  %v144_v7 = vperm.slane %v141_v5, 1  ;;  %v145_v10 = vperm.slane %v141_v5, 2  ;;  %v146_v14 = vperm.slane %v141_v5, 3 }
  0x91   :  { %v147_v18 = vperm.slane %v141_v5, 4  ;;  %v148_v24 = vperm.slane %v141_v5, 5  ;;  %v149_v34 = vperm.slane %v141_v5, 6  ;;  %v150_v40 = vperm.slane %v141_v5, 7 }
  0x92   :  { %v160_v11 = vsel %vm159_vm7, %v143_v6, 0.0  ;;  %v161_v12 = vsel %vm159_vm7, %v144_v7, 0.0  ;;  %v163_v15 = vsel %vm159_vm7, %v145_v10, 0.0  ;;  %v165_v19 = vsel %vm159_vm7, %v146_v14, 0.0 }
  0x93   :  { %s536_s12 = spop %535  ;;  %v162_v13 = vadd.f32 %v161_v12, %v160_v11  ;;  %v167_v25 = vsel %vm159_vm7, %v147_v18, 0.0  ;;  %v169_v35 = vsel %vm159_vm7, %v148_v24, 0.0  ;;  %v171_v41 = vsel %vm159_vm7, %v149_v34, 0.0 }
  0x94   :  { %s84_s13 = sadd.f32 %s536_s12, %s66_s11  ;;  %v173_v49 = vsel %vm159_vm7, %v150_v40, 0.0  ;;  %v249_v7 = vperm.slane %v715_v28, 0  ;;  %v252_v10 = vperm.slane %v715_v28, 3  ;;  %v253_v11 = vperm.slane %v715_v28, 4 }
  0x95   :  { %v164_v16 = vadd.f32 %v163_v15, %v162_v13  ;;  %v254_v12 = vperm.slane %v715_v28, 5  ;;  %v255_v13 = vperm.slane %v715_v28, 6  ;;  %v256_v14 = vperm.slane %v715_v28, 7 }
  0x96   :  { %s118_s16 = sadd.f32 %s713_s10, %s84_s13  ;;  %v240_v57 = vstv %s84_s13  ;;  %v274_v15 = vperm.slane %v717_v30, 0  ;;  %v277_v18 = vperm.slane %v717_v30, 3 }
  0x97   :  { %v241_v60 = vmul.f32 %v240_v57, %v239_v53  ;;  %v166_v22 = vadd.f32 %v165_v19, %v164_v16  ;;  %v275_v16 = vperm.slane %v717_v30, 1  ;;  %v278_v19 = vperm.slane %v717_v30, 4 }
  0x98   :  { %v736_v61 = vstv %s118_s16 }
  0x99   :  { %v181_v63 = vmul.f32 %v736_v61, %v715_v28  ;;  %v741_v0 = vadd.f32 %v241_v60, %v720_v31  ;;  %v168_v32 = vadd.f32 %v167_v25, %v166_v22  ;;  %v281_v22 = vperm.slane %v717_v30, 7 }
  0x9b   :  { %v182_v2 = vadd.f32 %v181_v63, %v717_v30  ;;  %245 = vperm.xlu0 %542, %v741_v0   ;;  %v170_v39 = vadd.f32 %v169_v35, %v168_v32 }
  0x9d   :  { %v524_v4 = vmul.f32 -1.442695, %v182_v2  ;;  %v172_v45 = vadd.f32 %v171_v41, %v170_v39 }
  0x9f   :  { %559 = vpow2.f32 %v524_v4  ;;  %v174_v54 = vadd.f32 %v173_v49, %v172_v45 }
  0xa5   :  { %v560_v8 = vpop.eup %559 }
  0xa6   :  { %v186_v9 = vadd.f32 1.0, %v560_v8  ;;  %v250_v8 = vperm.slane %v715_v28, 1 }
  0xa8   :  { %561 = vrcp.f32 %v186_v9  ;;  %v198_v23 = vand.u32 2147483648, %v186_v9  ;;  %v196_v27 = vand.u32 2147483647, %v186_v9  ;;  %vm192_vm9 = vweird.f32 %v186_v9 }
  0xaa   :  { %v199_v33 = vor.u32 1.1754944e-38, %v198_v23  ;;  %vm197_vm11 = vcmp.eq.f32.partialorder %v196_v27, 8.507059e+37 }
  0xae   :  { %v562_v17 = vpop.eup %561 }
  0xaf   :  { %v188_v20 = vmul.f32 %v562_v17, %v186_v9  ;;  %vm193_vm8 = vweird.f32 %v562_v17  ;;  %v251_v9 = vperm.slane %v715_v28, 2 }
  0xb0   :  { %vm194_vm10 = vmor %vm192_vm9, %vm193_vm8 }
  0xb1   :  { %v189_v21 = vsub.f32 1.0, %v188_v20  ;;  %v279_v20 = vperm.slane %v717_v30, 5 }
  0xb3   :  { %v190_v26 = vmul.f32 %v562_v17, %v189_v21  ;;  %v280_v21 = vperm.slane %v717_v30, 6 }
  0xb5   :  { %v191_v29 = vadd.f32 %v562_v17, %v190_v26 }
  0xb7   :  { %v195_v36 = vsel %vm194_vm10, %v562_v17, %v191_v29  ;;  %v276_v17 = vperm.slane %v717_v30, 2 }
  0xb8   :  { %v200_v37 = vsel %vm197_vm11, %v199_v33, %v195_v36 }
  0xb9   :  { %v202_v38 = vmul.f32 %v200_v37, %v743_v1 }
  0xbb   :  { %v204_v42 = vperm.slane %v202_v38, 0  ;;  %v205_v43 = vperm.slane %v202_v38, 1  ;;  %v206_v44 = vperm.slane %v202_v38, 2  ;;  %v207_v46 = vperm.slane %v202_v38, 3 }
  0xbc   :  { %v208_v51 = vperm.slane %v202_v38, 4  ;;  %v209_v55 = vperm.slane %v202_v38, 5  ;;  %v210_v58 = vperm.slane %v202_v38, 6  ;;  %v211_v62 = vperm.slane %v202_v38, 7 }
  0xbd   :  { %v220_v47 = vsel %vm159_vm7, %v204_v42, 0.0  ;;  %v221_v48 = vsel %vm159_vm7, %v205_v43, 0.0  ;;  %v223_v52 = vsel %vm159_vm7, %v206_v44, 0.0  ;;  %v225_v56 = vsel %vm159_vm7, %v207_v46, 0.0 }
  0xbe   :  { %v222_v50 = vadd.f32 %v221_v48, %v220_v47  ;;  %v227_v59 = vsel %vm159_vm7, %v208_v51, 0.0  ;;  %v229_v63 = vsel %vm159_vm7, %v209_v55, 0.0  ;;  %v231_v3 = vsel %vm159_vm7, %v210_v58, 0.0 }
  0xbf   :  { %v233_v5 = vsel %vm159_vm7, %v211_v62, 0.0 }
  0xc0   :  { %v224_v53 = vadd.f32 %v223_v52, %v222_v50 }
  0xc2   :  { %v226_v57 = vadd.f32 %v225_v56, %v224_v53 }
  0xc4   :  { %v228_v60 = vadd.f32 %v227_v59, %v226_v57 }
  0xc5   :  { %175 = vadd.xlane.f32.xlu0 %v174_v54 }
  0xc6   :  { %v230_v2 = vadd.f32 %v229_v63, %v228_v60 }
  0xc8   :  { %v232_v4 = vadd.f32 %v231_v3, %v230_v2 }
  0xca   :  { %v234_v6 = vadd.f32 %v233_v5, %v232_v4 }
  0xcc   :  { %235 = vadd.xlane.f32.xlu1 %v234_v6 }
 0x10d   :  { %v246_v23 = vpop.permute.xlu0 %245 }
 0x10e   :  { %v265_v24 = vmul.f32 %v249_v7, %v246_v23  ;;  %v266_v25 = vmul.f32 %v250_v8, %v246_v23  ;;  %v267_v28 = vmul.f32 %v251_v9, %v246_v23  ;;  %v268_v26 = vmul.f32 %v252_v10, %v246_v23 }
 0x10f   :  { %v269_v27 = vmul.f32 %v253_v11, %v246_v23  ;;  %v270_v29 = vmul.f32 %v254_v12, %v246_v23  ;;  %v271_v32 = vmul.f32 %v255_v13, %v246_v23  ;;  %v272_v33 = vmul.f32 %v256_v14, %v246_v23 }
 0x110   :  { %v290_v34 = vadd.f32 %v274_v15, %v265_v24  ;;  %v291_v35 = vadd.f32 %v275_v16, %v266_v25  ;;  %v292_v36 = vadd.f32 %v276_v17, %v267_v28  ;;  %v293_v37 = vadd.f32 %v277_v18, %v268_v26 }
 0x111   :  { %v294_v38 = vadd.f32 %v278_v19, %v269_v27  ;;  %v295_v39 = vadd.f32 %v279_v20, %v270_v29  ;;  %v296_v40 = vadd.f32 %v280_v21, %v271_v32  ;;  %v297_v41 = vadd.f32 %v281_v22, %v272_v33 }
 0x112   :  { %v525_v42 = vmul.f32 -1.442695, %v290_v34  ;;  %v526_v43 = vmul.f32 -1.442695, %v291_v35  ;;  %v527_v30 = vmul.f32 -1.442695, %v292_v36 }
 0x113   :  { %v528_v44 = vmul.f32 -1.442695, %v293_v37  ;;  %v529_v45 = vmul.f32 -1.442695, %v294_v38  ;;  %v530_v46 = vmul.f32 -1.442695, %v295_v39 }
 0x114   :  { %563 = vpow2.f32 %v525_v42  ;;  %v531_v47 = vmul.f32 -1.442695, %v296_v40  ;;  %v532_v48 = vmul.f32 -1.442695, %v297_v41  ;;  %v454_v25 = vperm.slane %v743_v1, 3 }
 0x115   :  { %565 = vpow2.f32 %v526_v43 }
 0x116   :  { %567 = vpow2.f32 %v527_v30 }
 0x117   :  { %569 = vpow2.f32 %v528_v44 }
 0x118   :  { %571 = vpow2.f32 %v529_v45 }
 0x119   :  { %573 = vpow2.f32 %v530_v46 }
 0x11a   :  { %v564_v49 = vpop.eup %563  ;;  %575 = vpow2.f32 %v531_v47 }
 0x11b   :  { %v566_v50 = vpop.eup %565  ;;  %v781_v51 = vadd.f32 1.0, %v564_v49  ;;  %577 = vpow2.f32 %v532_v48 }
 0x11c   :  { %v568_v52 = vpop.eup %567  ;;  %v783_v53 = vadd.f32 1.0, %v566_v50 }
 0x11d   :  { %v570_v54 = vpop.eup %569  ;;  %v785_v55 = vadd.f32 1.0, %v568_v52  ;;  %579 = vrcp.f32 %v781_v51  ;;  %v341_v63 = vand.u32 2147483648, %v781_v51  ;;  %vm335_vm12 = vweird.f32 %v781_v51 }
 0x11e   :  { %v572_v56 = vpop.eup %571  ;;  %v788_v57 = vadd.f32 1.0, %v570_v54  ;;  %581 = vrcp.f32 %v783_v53  ;;  %v356_v3 = vand.u32 2147483648, %v783_v53  ;;  %v339_v8 = vand.u32 2147483647, %v781_v51 }
 0x11f   :  { %v791_v58 = vadd.f32 1.0, %v572_v56  ;;  %583 = vrcp.f32 %v785_v55  ;;  %v574_v59 = vpop.eup %573  ;;  %v354_v10 = vand.u32 2147483647, %v783_v53  ;;  %v342_v14 = vor.u32 1.1754944e-38, %v341_v63 }
 0x120   :  { %585 = vrcp.f32 %v788_v57  ;;  %v576_v60 = vpop.eup %575  ;;  %v806_v7 = vadd.f32 1.0, %v574_v59  ;;  %vm350_vm13 = vweird.f32 %v783_v53  ;;  %v357_v19 = vor.u32 1.1754944e-38, %v356_v3 }
 0x121   :  { %587 = vrcp.f32 %v791_v58  ;;  %v578_v62 = vpop.eup %577  ;;  %v815_v12 = vadd.f32 1.0, %v576_v60  ;;  %vm365_vm14 = vweird.f32 %v785_v55  ;;  %v369_v23 = vand.u32 2147483647, %v785_v55 }
 0x122   :  { %v822_v17 = vadd.f32 1.0, %v578_v62  ;;  %vm831_vm15 = vcmp.eq.f32.partialorder %v339_v8, 8.507059e+37  ;;  %v371_v26 = vand.u32 2147483648, %v785_v55  ;;  %vm380_vm0 = vweird.f32 %v788_v57 }
 0x123   :  { %v797_v2 = vpop.eup %579  ;;  %v384_v32 = vand.u32 2147483647, %v788_v57  ;;  %589 = vrcp.f32 %v806_v7  ;;  %vm843_vm2 = vcmp.eq.f32.partialorder %v354_v10, 8.507059e+37  ;;  %v386_v37 = vand.u32 2147483648, %v788_v57 }
 0x124   :  { %v800_v4 = vpop.eup %581  ;;  %v331_v5 = vmul.f32 %v797_v2, %v781_v51  ;;  %vm336_vm1 = vweird.f32 %v797_v2  ;;  %vm851_vm4 = vcmp.eq.f32.partialorder %v369_v23, 8.507059e+37  ;;  %vm395_vm5 = vweird.f32 %v791_v58 }
 0x125   :  { %v804_v6 = vpop.eup %583  ;;  %v346_v9 = vmul.f32 %v800_v4, %v783_v53  ;;  %vm351_vm3 = vweird.f32 %v800_v4  ;;  %v372_v41 = vor.u32 1.1754944e-38, %v371_v26  ;;  %vm861_vm7 = vmor %vm335_vm12, %vm336_vm1  ;;  %vm866_vm9 = vcmp.eq.f32.partialorder %v384_v32, 8.507059e+37 }
 0x126   :  { %v813_v11 = vpop.eup %585  ;;  %v332_v13 = vsub.f32 1.0, %v331_v5  ;;  %v361_v15 = vmul.f32 %v804_v6, %v785_v55  ;;  %vm366_vm6 = vweird.f32 %v804_v6  ;;  %v399_v44 = vand.u32 2147483647, %v791_v58  ;;  %vm877_vm10 = vmor %vm350_vm13, %vm351_vm3 }
 0x127   :  { %v820_v16 = vpop.eup %587  ;;  %v347_v18 = vsub.f32 1.0, %v346_v9  ;;  %v376_v20 = vmul.f32 %v813_v11, %v788_v57  ;;  %vm381_vm8 = vweird.f32 %v813_v11  ;;  %v401_v45 = vand.u32 2147483648, %v791_v58  ;;  %vm891_vm11 = vmor %vm365_vm14, %vm366_vm6 }
 0x128   :  { %v333_v21 = vmul.f32 %v797_v2, %v332_v13  ;;  %v362_v22 = vsub.f32 1.0, %v361_v15  ;;  %v391_v24 = vmul.f32 %v820_v16, %v791_v58  ;;  %v414_v49 = vand.u32 2147483647, %v806_v7  ;;  %vm909_vm13 = vmor %vm380_vm0, %vm381_vm8 }
 0x129   :  { %v348_v28 = vmul.f32 %v800_v4, %v347_v18  ;;  %v377_v27 = vsub.f32 1.0, %v376_v20  ;;  %591 = vrcp.f32 %v815_v12  ;;  %v590_v50 = vpop.eup %589  ;;  %v387_v53 = vor.u32 1.1754944e-38, %v386_v37 }
 0x12a   :  { %v363_v29 = vmul.f32 %v804_v6, %v362_v22  ;;  %v392_v33 = vsub.f32 1.0, %v391_v24  ;;  %v334_v34 = vadd.f32 %v797_v2, %v333_v21  ;;  %vm396_vm12 = vweird.f32 %v820_v16 }
 0x12b   :  { %v378_v36 = vmul.f32 %v813_v11, %v377_v27  ;;  %v349_v38 = vadd.f32 %v800_v4, %v348_v28  ;;  %v416_v54 = vand.u32 2147483648, %v806_v7  ;;  %v406_v60 = vmul.f32 %v590_v50, %v806_v7  ;;  %vm935_vm0 = vmor %vm395_vm5, %vm396_vm12 }
 0x12c   :  { %v364_v40 = vadd.f32 %v804_v6, %v363_v29  ;;  %v393_v42 = vmul.f32 %v820_v16, %v392_v33  ;;  %v338_v46 = vsel %vm861_vm7, %v797_v2, %v334_v34  ;;  %593 = vrcp.f32 %v822_v17 }
 0x12d   :  { %v379_v48 = vadd.f32 %v813_v11, %v378_v36  ;;  %v353_v51 = vsel %vm877_vm10, %v800_v4, %v349_v38  ;;  %v343_v55 = vsel %vm831_vm15, %v342_v14, %v338_v46  ;;  %vm913_vm14 = vcmp.eq.f32.partialorder %v399_v44, 8.507059e+37 }
 0x12e   :  { %v368_v56 = vsel %vm891_vm11, %v804_v6, %v364_v40  ;;  %v394_v59 = vadd.f32 %v820_v16, %v393_v42  ;;  %v402_v2 = vor.u32 1.1754944e-38, %v401_v45  ;;  %vm410_vm1 = vweird.f32 %v806_v7 }
 0x12f   :  { %v383_v3 = vsel %vm909_vm13, %v813_v11, %v379_v48  ;;  %v407_v4 = vsub.f32 1.0, %v406_v60  ;;  %vm921_vm15 = vcmp.eq.f32.partialorder %v414_v49, 8.507059e+37  ;;  %v451_v57 = vperm.slane %v743_v1, 0  ;;  %v592_v14 = vpop.eup %591 }
 0x130   :  { %v452_v6 = vperm.slane %v743_v1, 1  ;;  %v358_v8 = vsel %vm843_vm2, %v357_v19, %v353_v51  ;;  %v373_v9 = vsel %vm851_vm4, %v372_v41, %v368_v56  ;;  %v417_v11 = vor.u32 1.1754944e-38, %v416_v54 }
 0x131   :  { %v429_v13 = vand.u32 2147483647, %v815_v12  ;;  %v398_v15 = vsel %vm935_vm0, %v820_v16, %v394_v59  ;;  %v408_v18 = vmul.f32 %v590_v50, %v407_v4  ;;  %vm411_vm2 = vweird.f32 %v590_v50 }
 0x132   :  { %v453_v19 = vperm.slane %v743_v1, 2  ;;  %v388_v20 = vsel %vm866_vm9, %v387_v53, %v383_v3  ;;  %v421_v58 = vmul.f32 %v592_v14, %v815_v12  ;;  %vm425_vm3 = vweird.f32 %v815_v12  ;;  %v594_v22 = vpop.eup %593  ;;  %vm954_vm4 = vmor %vm410_vm1, %vm411_vm2 }
 0x133   :  { %v467_v21 = vmul.f32 %v451_v57, %v343_v55  ;;  %v409_v23 = vadd.f32 %v590_v50, %v408_v18  ;;  %v431_v24 = vand.u32 2147483648, %v815_v12  ;;  %v468_v28 = vmul.f32 %v452_v6, %v358_v8 }
 0x134   :  { %v403_v16 = vsel %vm913_vm14, %v402_v2, %v398_v15  ;;  %v422_v27 = vsub.f32 1.0, %v421_v58  ;;  %vm958_vm5 = vcmp.eq.f32.partialorder %v429_v13, 8.507059e+37  ;;  %v436_v32 = vmul.f32 %v594_v22, %v822_v17 }
 0x135   :  { %v413_v33 = vsel %vm954_vm4, %v590_v50, %v409_v23  ;;  %v455_v34 = vperm.slane %v743_v1, 4  ;;  %v469_v35 = vmul.f32 %v453_v19, %v373_v9  ;;  %v475_v36 = vadd.f32 %v468_v28, %v467_v21 }
 0x136   :  { %v423_v37 = vmul.f32 %v592_v14, %v422_v27  ;;  %vm426_vm6 = vweird.f32 %v592_v14  ;;  %v437_v7 = vsub.f32 1.0, %v436_v32  ;;  %v446_v38 = vand.u32 2147483648, %v822_v17 }
 0x137   :  { %v444_v39 = vand.u32 2147483647, %v822_v17  ;;  %v456_v40 = vperm.slane %v743_v1, 5  ;;  %v470_v41 = vmul.f32 %v454_v25, %v388_v20  ;;  %v476_v42 = vadd.f32 %v475_v36, %v469_v35  ;;  %vm427_vm8 = vmor %vm425_vm3, %vm426_vm6 }
 0x138   :  { %v418_v43 = vsel %vm921_vm15, %v417_v11, %v413_v33  ;;  %v424_v30 = vadd.f32 %v592_v14, %v423_v37  ;;  %v438_v44 = vmul.f32 %v594_v22, %v437_v7  ;;  %vm441_vm7 = vweird.f32 %v594_v22  ;;  %v176_v3 = vpop.xlane.xlu0 %175 }
 0x139   :  { %v432_v45 = vor.u32 1.1754944e-38, %v431_v24  ;;  %v457_v46 = vperm.slane %v743_v1, 6  ;;  %v471_v47 = vmul.f32 %v455_v34, %v403_v16  ;;  %v477_v48 = vadd.f32 %v476_v42, %v470_v41 }
 0x13a   :  { %v428_v49 = vsel %vm427_vm8, %v592_v14, %v424_v30  ;;  %v439_v50 = vadd.f32 %v594_v22, %v438_v44  ;;  %vm440_vm9 = vweird.f32 %v822_v17  ;;  %v447_v51 = vor.u32 1.1754944e-38, %v446_v38 }
 0x13b   :  { %v433_v52 = vsel %vm958_vm5, %v432_v45, %v428_v49  ;;  %vm442_vm10 = vmor %vm440_vm9, %vm441_vm7  ;;  %v458_v53 = vperm.slane %v743_v1, 7  ;;  %v472_v54 = vmul.f32 %v456_v40, %v418_v43  ;;  %v478_v56 = vadd.f32 %v477_v48, %v471_v47 }
 0x13c   :  { %v443_v12 = vsel %vm442_vm10, %v594_v22, %v439_v50  ;;  %vm445_vm11 = vcmp.eq.f32.partialorder %v444_v39, 8.507059e+37  ;;  %v473_v60 = vmul.f32 %v457_v46, %v433_v52  ;;  %v177_v17 = vstv %s520_s4 }
 0x13d   :  { %v448_v59 = vsel %vm445_vm11, %v447_v51, %v443_v12  ;;  %v479_v55 = vadd.f32 %v478_v56, %v472_v54  ;;  %v178_v5 = vadd.f32 %v177_v17, %v176_v3  ;;  %v508_v16 = vstv %s521_s17 }
 0x13e   :  { %v474_v62 = vmul.f32 %v458_v53, %v448_v59  ;;  %vm510_vm15 = vcmask 7168  }
 0x13f   :  { %v480_v63 = vadd.f32 %v479_v55, %v473_v60  ;;  %v236_v4 = vpop.xlane.xlu1 %235  ;;  %v179_v6 = vadd.f32 %v178_v5, %v720_v31  ;;  %v488_v31 = vstv %s486_s19 }
 0x140   :  { %v237_v57 = vadd.f32 %v236_v4, %v177_v17 }
 0x141   :  { %v481_v2 = vadd.f32 %v480_v63, %v474_v62  ;;  %v504_v23 = vperm.slane %v179_v6, 0 }
 0x142   :  { %v238_v1 = vadd.f32 %v237_v57, %v736_v61 }
 0x143   :  { %482 = vadd.xlane.f32.xlu1 %v481_v2 }
 0x144   :  { %v487_v8 = vsub.f32 %v238_v1, %v179_v6 }
 0x146   :  { %595 = vrcp.f32 %v487_v8  ;;  %v500_v15 = vand.u32 2147483648, %v487_v8  ;;  %vm494_vm13 = vweird.f32 %v487_v8  ;;  %v498_v18 = vand.u32 2147483647, %v487_v8 }
 0x148   :  { %v501_v20 = vor.u32 1.1754944e-38, %v500_v15  ;;  %vm499_vm1 = vcmp.eq.f32.partialorder %v498_v18, 8.507059e+37 }
 0x14c   :  { %v596_v9 = vpop.eup %595 }
 0x14d   :  { %v490_v10 = vmul.f32 %v596_v9, %v487_v8  ;;  %vm495_vm12 = vweird.f32 %v596_v9 }
 0x14e   :  { %vm496_vm14 = vmor %vm494_vm13, %vm495_vm12 }
 0x14f   :  { %v491_v11 = vsub.f32 1.0, %v490_v10 }
 0x151   :  { %v492_v13 = vmul.f32 %v596_v9, %v491_v11 }
 0x153   :  { %v493_v14 = vadd.f32 %v596_v9, %v492_v13 }
 0x155   :  { %v497_v19 = vsel %vm496_vm14, %v596_v9, %v493_v14 }
 0x156   :  { %v502_v61 = vsel %vm499_vm1, %v501_v20, %v497_v19 }
 0x157   :  { %v503_v21 = vmul.f32 %v502_v61, %v488_v31 }
 0x159   :  { %v506_v25 = vperm.slane %v503_v21, 0 }
 0x1b6   :  { %v483_v58 = vpop.xlane.xlu1 %482 }
 0x1b7   :  { %v484_v22 = vadd.f32 %v483_v58, %v177_v17 }
 0x1b9   :  { %v485_v24 = vadd.f32 %v484_v22, %v741_v0 }
 0x1bb   :  { %v505_v28 = vsub.f32 %v485_v24, %v504_v23 }
 0x1bd   :  { %v507_v26 = vmul.f32 %v506_v25, %v505_v28 }
 0x1bf   :  { %v509_v27 = vadd.f32 %v508_v16, %v507_v26 }
 0x1c1   :  { %511 = vst.msk [vmem:[%s989_s5] sm:$0xff] %vm510_vm15, %v509_v27 }
 0x1c2   :  { %516 = vsyncpa [#allocation3], 1 }
 0x1c3   :  { %517 = vsyncpa [#allocation7], 1 }
 0x1c4   :  { %518 = vsyncpa [#allocation4], 1 }

</bundles_post_ra>
